<compile_context>
chip_gen: v7x
topology: tpu7x:2x2x1
jax: 0.10.0
libtpu: 0.0.40
codegen_flags: <defaults>
</compile_context>

<pallas_src>
import numpy as np
import jax
import jax.numpy as jnp
from jax.experimental import pallas as pl
from jax.experimental.pallas import tpu as pltpu

_G = 8            # guard rows around the im2col staging scratch (sublane aligned)
_OUT_LANES = 128  # lane-dense output width; the 2 real classes live in lanes 0..1


# ------------------------------ in-kernel building blocks ------------------------------ #

def _pos_index(r, lc):
    """Position-within-sample index for each of the r rows, shape (r, 1) int32."""
    rows = jax.lax.broadcasted_iota(jnp.int32, (r, 1), 0)
    if lc & (lc - 1) == 0:          # power of two -> cheap AND
        return rows & (lc - 1)
    # TODO(synk): non-power-of-two sample lengths use an integer remainder; verify on older Mosaic.
    return rows % lc


def _conv_relu_pool(feat, w_ref, b_ref, cin, cout, lc, sc_im, sc_pool):
    """Conv1d(k=3, pad=1) + ReLU + MaxPool1d(2) on a channels-last (r, cin) tile.

    Rows are ordered sample-major / position-minor: row = b_local * lc + pos.
    Returns the pooled activation, shape (r // 2, cout), f32.
    """
    r = feat.shape[0]
    pos = _pos_index(r, lc)

    # In-kernel im2col: stash the tile once at a sublane-aligned guard offset, read the +-1
    # shifted row windows back.  Batch-boundary / sequence-edge rows are replaced by the
    # Conv1d zero padding with a select, so stale scratch contents (even NaNs) never leak and
    # the scratch needs no zero-initialisation.
    sc_im[_G:_G + r, 0:cin] = feat
    left = jnp.where(pos != 0, sc_im[_G - 1:_G - 1 + r, 0:cin], 0.0)
    right = jnp.where(pos != lc - 1, sc_im[_G + 1:_G + 1 + r, 0:cin], 0.0)

    if cin == 1:
        # Degenerate 1-input-channel conv: VPU broadcast-multiplies beat a K=3 MXU matmul.
        w = w_ref[...].astype(jnp.float32)                       # (3, cout)
        h = left * w[0:1, :] + feat * w[1:2, :] + right * w[2:3, :]
    else:
        # Tap fusion: assemble [left | centre | right] in-register (lane concat) and run ONE
        # wide-K MXU dot (K = 3*cin) against the (3*cin, cout) weight instead of three
        # per-tap matmuls plus two VPU accumulate adds.
        taps = jnp.concatenate([left, feat, right], axis=1).astype(jnp.bfloat16)
        h = jnp.dot(taps, w_ref[...], preferred_element_type=jnp.float32)

    h = jnp.maximum(h + b_ref[...], 0.0)                         # bias + ReLU, (r, cout) f32

    # MaxPool1d(2): elementwise max of even / odd position rows via strided VMEM reads.
    sc_pool[0:r, 0:cout] = h
    even = sc_pool[pl.ds(0, r // 2, 2), 0:cout]
    odd = sc_pool[pl.ds(1, r // 2, 2), 0:cout]
    return jnp.maximum(even, odd)                                # (r // 2, cout)


def _make_kernel(bt, l):
    l1, l2, l3 = l // 2, l // 4, l // 8

    def kernel(x_ref, w1_ref, b1_ref, w2_ref, b2_ref, w3_ref, b3_ref,
               wf1_ref, bf1_ref, wf2_ref, bf2_ref,
               o_ref, sc_im, sc_pool):
        # ---- features: 3 x [Conv1d -> ReLU -> MaxPool1d(2)]; Dropout(0.25) = identity ----
        f0 = x_ref[...]                                                      # (bt*l, 1) f32
        f1 = _conv_relu_pool(f0, w1_ref, b1_ref, 1, 32, l, sc_im, sc_pool)   # (bt*l/2, 32)
        f2 = _conv_relu_pool(f1, w2_ref, b2_ref, 32, 64, l1, sc_im, sc_pool)  # (bt*l/4, 64)
        f3 = _conv_relu_pool(f2, w3_ref, b3_ref, 64, 32, l2, sc_im, sc_pool)  # (bt*l3, 32)

        # ---- classifier: Linear -> ReLU -> Linear -> softmax (Dropout(0.5) = identity) ----
        # The PyTorch NCL flatten transpose is folded into wf1 at init (position-major rows),
        # so the flatten is: per-position (bt, 32) strided row blocks lane-concatenated into
        # (bt, 32*l3), followed by ONE wide-K fc1 dot.
        sc_im[_G:_G + bt * l3, 0:32] = f3
        blocks = [sc_im[pl.ds(_G + p, bt, l3), 0:32] for p in range(l3)]
        hflat = jnp.concatenate(blocks, axis=1).astype(jnp.bfloat16)          # (bt, 32*l3)
        h1 = jnp.dot(hflat, wf1_ref[...], preferred_element_type=jnp.float32) + bf1_ref[...]
        h1 = jnp.maximum(h1, 0.0)

        # fc2 weight/bias are padded to 128 lanes (pad bias = -1e30), so the softmax is
        # lane-dense, padded lanes come out exactly 0, and the store below is an unmasked vst.
        logits = jnp.dot(h1.astype(jnp.bfloat16), wf2_ref[...],
                         preferred_element_type=jnp.float32) + bf2_ref[...]   # (bt, 128)
        m = jnp.max(logits, axis=1, keepdims=True)
        e = jnp.exp(logits - m)
        o_ref[...] = e / jnp.sum(e, axis=1, keepdims=True)

    return kernel


# ------------------------------------- parameters -------------------------------------- #

def init_params(input_dim, key):
    assert input_dim >= 8 and input_dim % 8 == 0, "input_dim must be a multiple of 8"
    l3 = input_dim // 8
    fc_in = 32 * ((input_dim + 3) // 8)      # PyTorch's fc_input_dim (== 32*l3 here)
    ks = jax.random.split(key, 10)

    def w(k, shape, fan_in):
        return (jax.random.normal(k, shape, jnp.float32) / np.sqrt(fan_in)).astype(jnp.bfloat16)

    def b(k, n):
        return 0.01 * jax.random.normal(k, (1, n), jnp.float32)

    params = {
        # conv weights stored as (3*Cin, Cout), rows ordered (tap k major, in-channel minor)
        "w1": w(ks[0], (3 * 1, 32), 3.0), "b1": b(ks[1], 32),
        "w2": w(ks[2], (3 * 32, 64), 96.0), "b2": b(ks[3], 64),
        "w3": w(ks[4], (3 * 64, 32), 192.0), "b3": b(ks[5], 32),
        "bf1": b(ks[7], 64),
        "wf2": w(ks[8], (64, 2), 64.0), "bf2": b(ks[9], 2),
    }
    # fc1 weight: generated in PyTorch flatten order (channel-major rows: c*l3 + p), then the
    # NCL->NLC flatten transpose is folded into the weight (one-time relayout) so the kernel
    # consumes position-major (p*32 + c) columns with no runtime transpose.
    wf1_pt = jax.random.normal(ks[6], (fc_in, 64), jnp.float32) / np.sqrt(fc_in)
    wf1 = wf1_pt.reshape(32, l3, 64).transpose(1, 0, 2).reshape(fc_in, 64)
    params["wf1"] = wf1.astype(jnp.bfloat16)
    return params


# --------------------------------------- wrapper ---------------------------------------- #

def _pick_batch_tile(b, l):
    """Largest usable batch tile: fits a ~20 MiB working-set budget (input block is lane-
    padded to 128 lanes and double-buffered; scratches + compiler temporaries included),
    capped at 512, and split into >=2 grid steps for large batches (v7x has 2 TensorCores)."""
    per_sample = 3400 * l + 8192                     # bytes/sample, conservative
    cap = max(1, min(512, (20 * 1024 * 1024) // per_sample))
    if b >= 128:
        cap = min(cap, max(64, b // 2))              # ensure >= 2 grid steps
    best = 0
    for d in range(1, min(b, cap) + 1):
        if b % d == 0 and (d == b or d % 8 == 0):
            best = d
    if best == 0:
        # TODO(synk): pad ragged batches to a multiple of 8 instead of failing.
        raise ValueError("no usable batch tile; pad the batch to a multiple of 8")
    return best


@jax.jit
def cnn_forward(x, params):
    """x: (B, input_dim) float32 -> class probabilities (B, 2) float32."""
    b, l = x.shape
    if l < 8 or l % 8 != 0:
        # TODO(synk): support input_dim not divisible by 8 (PyTorch MaxPool1d floors odd lengths).
        raise ValueError("input_dim must be a multiple of 8")
    bt = _pick_batch_tile(b, l)
    rows = bt * l
    l3 = l // 8

    # channels-last rows (sample-major, position-minor).  The (rows, 1) block lane-pads in
    # VMEM; that padding is accounted for in _pick_batch_tile's budget.
    x2 = x.astype(jnp.float32).reshape(b * l, 1)

    # Lane-dense classifier head: pad fc2 to 128 output lanes; pad bias = -1e30 so padded
    # lanes contribute exp() = 0 to the softmax and come out exactly 0.
    wf2p = jnp.zeros((64, _OUT_LANES), jnp.bfloat16).at[:, :2].set(params["wf2"])
    bf2p = jnp.full((1, _OUT_LANES), -1e30, jnp.float32).at[:, :2].set(params["bf2"])

    weights = (params["w1"], params["b1"], params["w2"], params["b2"],
               params["w3"], params["b3"], params["wf1"], params["bf1"],
               wf2p, bf2p)

    def resident(a):   # whole-array block, same block every grid step -> stays VMEM-resident
        return pl.BlockSpec(a.shape, lambda i: (0,) * a.ndim)

    probs_padded = pl.pallas_call(
        _make_kernel(bt, l),
        grid=(b // bt,),
        in_specs=[pl.BlockSpec((rows, 1), lambda i: (i, 0))] + [resident(w) for w in weights],
        out_specs=pl.BlockSpec((bt, _OUT_LANES), lambda i: (i, 0)),
        out_shape=jax.ShapeDtypeStruct((b, _OUT_LANES), jnp.float32),
        scratch_shapes=[
            pltpu.VMEM((rows + 2 * _G, 64), jnp.float32),   # im2col staging (+ guard rows)
            pltpu.VMEM((rows, 64), jnp.float32),            # pre-pool activations
        ],
        compiler_params=pltpu.CompilerParams(
            dimension_semantics=("parallel",),              # batch tiles -> both TCs on v7x
            vmem_limit_bytes=48 * 1024 * 1024,
        ),
    )(x2, *weights)
    return probs_padded[:, :2]


# ------------------------------ pure-JAX reference (check) ------------------------------ #

def _reference_forward(x, params):
    """Mirrors the kernel math (bf16 matmuls, folded fc1 layout) with plain jnp ops."""
    b = x.shape[0]
    f = x.astype(jnp.float32)[:, :, None]                         # (b, L, 1) channels-last
    for wname, bname in (("w1", "b1"), ("w2", "b2"), ("w3", "b3")):
        wk = params[wname]
        cin = wk.shape[0] // 3
        left = jnp.pad(f, ((0, 0), (1, 0), (0, 0)))[:, :-1, :]
        right = jnp.pad(f, ((0, 0), (0, 1), (0, 0)))[:, 1:, :]
        taps = jnp.concatenate([left, f, right], axis=-1)         # (b, L, 3*cin)
        if cin == 1:
            h = jnp.einsum("blk,kc->blc", taps, wk.astype(jnp.float32))
        else:
            h = jnp.einsum("blk,kc->blc", taps.astype(jnp.bfloat16), wk,
                           preferred_element_type=jnp.float32)
        h = jnp.maximum(h + params[bname][None], 0.0)
        f = h.reshape(b, h.shape[1] // 2, 2, h.shape[2]).max(axis=2)
    flat = f.reshape(b, -1)                                       # position-major flatten
    h1 = jnp.maximum(jnp.dot(flat.astype(jnp.bfloat16), params["wf1"],
                             preferred_element_type=jnp.float32) + params["bf1"], 0.0)
    logits = jnp.dot(h1.astype(jnp.bfloat16), params["wf2"],
                     preferred_element_type=jnp.float32) + params["bf2"]
    return jax.nn.softmax(logits, axis=-1)


# ----------------------------------------- main ----------------------------------------- #

if __name__ == "__main__":
    key = jax.random.PRNGKey(0)
    k_x, k_p = jax.random.split(key)

    B, INPUT_DIM = 2, 16
    x = jax.random.normal(k_x, (B, INPUT_DIM), jnp.float32)
    params = init_params(INPUT_DIM, k_p)

    probs = cnn_forward(x, params)
    probs = jax.block_until_ready(probs)

    assert probs.shape == (B, 2), probs.shape
    assert bool(jnp.all(jnp.isfinite(probs)))
    assert bool(jnp.all(probs >= 0.0))
    assert bool(jnp.allclose(jnp.sum(probs, axis=1), 1.0, atol=1e-5))

    ref = _reference_forward(x, params)
    assert bool(jnp.allclose(probs, ref, atol=5e-2)), (probs, ref)

    print("KERNEL_OK")
</pallas_src>

<mosaic_0001>
module attributes {stable_mosaic.version = 11 : i64} {
  func.func @kernel(%arg0: i32, %arg1: memref<32x1xf32, #tpu.memory_space<vmem>>, %arg2: memref<3x32xbf16, #tpu.memory_space<vmem>>, %arg3: memref<1x32xf32, #tpu.memory_space<vmem>>, %arg4: memref<96x64xbf16, #tpu.memory_space<vmem>>, %arg5: memref<1x64xf32, #tpu.memory_space<vmem>>, %arg6: memref<192x32xbf16, #tpu.memory_space<vmem>>, %arg7: memref<1x32xf32, #tpu.memory_space<vmem>>, %arg8: memref<64x64xbf16, #tpu.memory_space<vmem>>, %arg9: memref<1x64xf32, #tpu.memory_space<vmem>>, %arg10: memref<64x128xbf16, #tpu.memory_space<vmem>>, %arg11: memref<1x128xf32, #tpu.memory_space<vmem>>, %arg12: memref<2x128xf32, #tpu.memory_space<vmem>>, %arg13: memref<48x64xf32, #tpu.memory_space<vmem>>, %arg14: memref<32x64xf32, #tpu.memory_space<vmem>>) attributes {dimension_semantics = [#tpu.dimension_semantics<parallel>], iteration_bounds = array<i64: 1>, scalar_prefetch = 0 : i64, scratch_operands = 2 : i64, tpu.core_type = #tpu.core_type<tc>, window_params = [{transform_indices = @transform_0, window_bounds = array<i64: 32, 1>}, {pipeline_mode = #tpu.pipeline_mode<synchronous>, transform_indices = @transform_1, window_bounds = array<i64: 3, 32>}, {pipeline_mode = #tpu.pipeline_mode<synchronous>, transform_indices = @transform_2, window_bounds = array<i64: 1, 32>}, {pipeline_mode = #tpu.pipeline_mode<synchronous>, transform_indices = @transform_3, window_bounds = array<i64: 96, 64>}, {pipeline_mode = #tpu.pipeline_mode<synchronous>, transform_indices = @transform_4, window_bounds = array<i64: 1, 64>}, {pipeline_mode = #tpu.pipeline_mode<synchronous>, transform_indices = @transform_5, window_bounds = array<i64: 192, 32>}, {pipeline_mode = #tpu.pipeline_mode<synchronous>, transform_indices = @transform_6, window_bounds = array<i64: 1, 32>}, {pipeline_mode = #tpu.pipeline_mode<synchronous>, transform_indices = @transform_7, window_bounds = array<i64: 64, 64>}, {pipeline_mode = #tpu.pipeline_mode<synchronous>, transform_indices = @transform_8, window_bounds = array<i64: 1, 64>}, {pipeline_mode = #tpu.pipeline_mode<synchronous>, transform_indices = @transform_9, window_bounds = array<i64: 64, 128>}, {pipeline_mode = #tpu.pipeline_mode<synchronous>, transform_indices = @transform_10, window_bounds = array<i64: 1, 128>}, {transform_indices = @transform_11, window_bounds = array<i64: 2, 128>}]} {
    %c0 = arith.constant 0 : index
    %c0_0 = arith.constant 0 : index
    %0 = vector.load %arg1[%c0, %c0_0] : memref<32x1xf32, #tpu.memory_space<vmem>>, vector<32x1xf32>
    %1 = tpu.iota {dimensions = array<i32: 0>} : vector<32x1xi32>
    %c15_i32 = arith.constant 15 : i32
    %2 = vector.broadcast %c15_i32 : i32 to vector<32x1xi32>
    %3 = arith.andi %1, %2 : vector<32x1xi32>
    %c8 = arith.constant 8 : index
    %c0_1 = arith.constant 0 : index
    %4 = vector.load %arg13[%c8, %c0_1] : memref<48x64xf32, #tpu.memory_space<vmem>>, vector<32x1xf32>
    tpu.vector_store %arg13[%c8, %c0_1], %0 {strides = array<i32>} : memref<48x64xf32, #tpu.memory_space<vmem>>, vector<32x1xf32>,
    %c0_i32 = arith.constant 0 : i32
    %5 = vector.broadcast %c0_i32 : i32 to vector<32x1xi32>
    %6 = arith.cmpi ne, %3, %5 : vector<32x1xi32>
    %c7 = arith.constant 7 : index
    %c0_2 = arith.constant 0 : index
    %7 = vector.load %arg13[%c7, %c0_2] : memref<48x64xf32, #tpu.memory_space<vmem>>, vector<32x1xf32>
    %cst = arith.constant 0.000000e+00 : f32
    %8 = vector.broadcast %cst : f32 to vector<32x1xf32>
    %9 = arith.select %6, %7, %8 : vector<32x1xi1>, vector<32x1xf32>
    %c15_i32_3 = arith.constant 15 : i32
    %10 = vector.broadcast %c15_i32_3 : i32 to vector<32x1xi32>
    %11 = arith.cmpi ne, %3, %10 : vector<32x1xi32>
    %c9 = arith.constant 9 : index
    %c0_4 = arith.constant 0 : index
    %12 = vector.load %arg13[%c9, %c0_4] : memref<48x64xf32, #tpu.memory_space<vmem>>, vector<32x1xf32>
    %cst_5 = arith.constant 0.000000e+00 : f32
    %13 = vector.broadcast %cst_5 : f32 to vector<32x1xf32>
    %14 = arith.select %11, %12, %13 : vector<32x1xi1>, vector<32x1xf32>
    %c0_6 = arith.constant 0 : index
    %c0_7 = arith.constant 0 : index
    %15 = vector.load %arg2[%c0_6, %c0_7] : memref<3x32xbf16, #tpu.memory_space<vmem>>, vector<3x32xbf16>
    %16 = arith.extf %15 : vector<3x32xbf16> to vector<3x32xf32>
    %17 = vector.extract_strided_slice %16 {offsets = [0, 0], sizes = [1, 32], strides = [1, 1]} : vector<3x32xf32> to vector<1x32xf32>
    %18 = vector.broadcast %9 : vector<32x1xf32> to vector<32x32xf32>
    %19 = vector.broadcast %17 : vector<1x32xf32> to vector<32x32xf32>
    %20 = arith.mulf %18, %19 : vector<32x32xf32>
    %21 = vector.extract_strided_slice %16 {offsets = [1, 0], sizes = [1, 32], strides = [1, 1]} : vector<3x32xf32> to vector<1x32xf32>
    %22 = vector.broadcast %0 : vector<32x1xf32> to vector<32x32xf32>
    %23 = vector.broadcast %21 : vector<1x32xf32> to vector<32x32xf32>
    %24 = arith.mulf %22, %23 : vector<32x32xf32>
    %25 = arith.addf %20, %24 : vector<32x32xf32>
    %26 = vector.extract_strided_slice %16 {offsets = [2, 0], sizes = [1, 32], strides = [1, 1]} : vector<3x32xf32> to vector<1x32xf32>
    %27 = vector.broadcast %14 : vector<32x1xf32> to vector<32x32xf32>
    %28 = vector.broadcast %26 : vector<1x32xf32> to vector<32x32xf32>
    %29 = arith.mulf %27, %28 : vector<32x32xf32>
    %30 = arith.addf %25, %29 : vector<32x32xf32>
    %c0_8 = arith.constant 0 : index
    %c0_9 = arith.constant 0 : index
    %31 = vector.load %arg3[%c0_8, %c0_9] : memref<1x32xf32, #tpu.memory_space<vmem>>, vector<1x32xf32>
    %32 = vector.broadcast %31 : vector<1x32xf32> to vector<32x32xf32>
    %33 = arith.addf %30, %32 : vector<32x32xf32>
    %cst_10 = arith.constant 0.000000e+00 : f32
    %34 = vector.broadcast %cst_10 : f32 to vector<32x32xf32>
    %35 = arith.maximumf %33, %34 : vector<32x32xf32>
    %c0_11 = arith.constant 0 : index
    %c0_12 = arith.constant 0 : index
    %36 = vector.load %arg14[%c0_11, %c0_12] : memref<32x64xf32, #tpu.memory_space<vmem>>, vector<32x32xf32>
    tpu.vector_store %arg14[%c0_11, %c0_12], %35 {strides = array<i32>} : memref<32x64xf32, #tpu.memory_space<vmem>>, vector<32x32xf32>,
    %c0_13 = arith.constant 0 : index
    %c0_14 = arith.constant 0 : index
    %37 = tpu.strided_load %arg14[%c0_13, %c0_14] {strides = array<i32: 2, 1>} : memref<32x64xf32, #tpu.memory_space<vmem>>, vector<16x32xf32>
    %c1 = arith.constant 1 : index
    %c0_15 = arith.constant 0 : index
    %38 = tpu.strided_load %arg14[%c1, %c0_15] {strides = array<i32: 2, 1>} : memref<32x64xf32, #tpu.memory_space<vmem>>, vector<16x32xf32>
    %39 = arith.maximumf %37, %38 : vector<16x32xf32>
    %40 = tpu.iota {dimensions = array<i32: 0>} : vector<16x1xi32>
    %c7_i32 = arith.constant 7 : i32
    %41 = vector.broadcast %c7_i32 : i32 to vector<16x1xi32>
    %42 = arith.andi %40, %41 : vector<16x1xi32>
    %c8_16 = arith.constant 8 : index
    %c0_17 = arith.constant 0 : index
    %43 = vector.load %arg13[%c8_16, %c0_17] : memref<48x64xf32, #tpu.memory_space<vmem>>, vector<16x32xf32>
    tpu.vector_store %arg13[%c8_16, %c0_17], %39 {strides = array<i32>} : memref<48x64xf32, #tpu.memory_space<vmem>>, vector<16x32xf32>,
    %c0_i32_18 = arith.constant 0 : i32
    %44 = vector.broadcast %c0_i32_18 : i32 to vector<16x1xi32>
    %45 = arith.cmpi ne, %42, %44 : vector<16x1xi32>
    %c7_19 = arith.constant 7 : index
    %c0_20 = arith.constant 0 : index
    %46 = vector.load %arg13[%c7_19, %c0_20] : memref<48x64xf32, #tpu.memory_space<vmem>>, vector<16x32xf32>
    %cst_21 = arith.constant 0.000000e+00 : f32
    %47 = vector.shape_cast %45 : vector<16x1xi1> to vector<16x1xi1>
    %48 = vector.broadcast %47 : vector<16x1xi1> to vector<16x32xi1>
    %49 = vector.broadcast %cst_21 : f32 to vector<16x32xf32>
    %50 = arith.select %48, %46, %49 : vector<16x32xi1>, vector<16x32xf32>
    %c7_i32_22 = arith.constant 7 : i32
    %51 = vector.broadcast %c7_i32_22 : i32 to vector<16x1xi32>
    %52 = arith.cmpi ne, %42, %51 : vector<16x1xi32>
    %c9_23 = arith.constant 9 : index
    %c0_24 = arith.constant 0 : index
    %53 = vector.load %arg13[%c9_23, %c0_24] : memref<48x64xf32, #tpu.memory_space<vmem>>, vector<16x32xf32>
    %cst_25 = arith.constant 0.000000e+00 : f32
    %54 = vector.shape_cast %52 : vector<16x1xi1> to vector<16x1xi1>
    %55 = vector.broadcast %54 : vector<16x1xi1> to vector<16x32xi1>
    %56 = vector.broadcast %cst_25 : f32 to vector<16x32xf32>
    %57 = arith.select %55, %53, %56 : vector<16x32xi1>, vector<16x32xf32>
    %58 = tpu.concatenate %50, %39, %57 in 1 : vector<16x32xf32>, vector<16x32xf32>, vector<16x32xf32> -> vector<16x96xf32>
    %59 = arith.truncf %58 : vector<16x96xf32> to vector<16x96xbf16>
    %c0_26 = arith.constant 0 : index
    %c0_27 = arith.constant 0 : index
    %60 = vector.load %arg4[%c0_26, %c0_27] : memref<96x64xbf16, #tpu.memory_space<vmem>>, vector<96x64xbf16>
    %cst_28 = arith.constant dense<0.000000e+00> : vector<16x64xf32>
    %61 = tpu.matmul %59, %60, %cst_28 {dimension_numbers = #tpu.dot_dimension_numbers<[1], [0], [0], [1], [0, 0, 1, 1], [], []>} : vector<16x96xbf16>, vector<96x64xbf16>, vector<16x64xf32> -> vector<16x64xf32>
    %c0_29 = arith.constant 0 : index
    %c0_30 = arith.constant 0 : index
    %62 = vector.load %arg5[%c0_29, %c0_30] : memref<1x64xf32, #tpu.memory_space<vmem>>, vector<1x64xf32>
    %63 = vector.broadcast %62 : vector<1x64xf32> to vector<16x64xf32>
    %64 = arith.addf %61, %63 : vector<16x64xf32>
    %cst_31 = arith.constant 0.000000e+00 : f32
    %65 = vector.broadcast %cst_31 : f32 to vector<16x64xf32>
    %66 = arith.maximumf %64, %65 : vector<16x64xf32>
    %c0_32 = arith.constant 0 : index
    %c0_33 = arith.constant 0 : index
    %67 = vector.load %arg14[%c0_32, %c0_33] : memref<32x64xf32, #tpu.memory_space<vmem>>, vector<16x64xf32>
    tpu.vector_store %arg14[%c0_32, %c0_33], %66 {strides = array<i32>} : memref<32x64xf32, #tpu.memory_space<vmem>>, vector<16x64xf32>,
    %c0_34 = arith.constant 0 : index
    %c0_35 = arith.constant 0 : index
    %68 = tpu.strided_load %arg14[%c0_34, %c0_35] {strides = array<i32: 2, 1>} : memref<32x64xf32, #tpu.memory_space<vmem>>, vector<8x64xf32>
    %c1_36 = arith.constant 1 : index
    %c0_37 = arith.constant 0 : index
    %69 = tpu.strided_load %arg14[%c1_36, %c0_37] {strides = array<i32: 2, 1>} : memref<32x64xf32, #tpu.memory_space<vmem>>, vector<8x64xf32>
    %70 = arith.maximumf %68, %69 : vector<8x64xf32>
    %71 = tpu.iota {dimensions = array<i32: 0>} : vector<8x1xi32>
    %c3_i32 = arith.constant 3 : i32
    %72 = vector.broadcast %c3_i32 : i32 to vector<8x1xi32>
    %73 = arith.andi %71, %72 : vector<8x1xi32>
    %c8_38 = arith.constant 8 : index
    %c0_39 = arith.constant 0 : index
    %74 = vector.load %arg13[%c8_38, %c0_39] : memref<48x64xf32, #tpu.memory_space<vmem>>, vector<8x64xf32>
    tpu.vector_store %arg13[%c8_38, %c0_39], %70 {strides = array<i32>} : memref<48x64xf32, #tpu.memory_space<vmem>>, vector<8x64xf32>,
    %c0_i32_40 = arith.constant 0 : i32
    %75 = vector.broadcast %c0_i32_40 : i32 to vector<8x1xi32>
    %76 = arith.cmpi ne, %73, %75 : vector<8x1xi32>
    %c7_41 = arith.constant 7 : index
    %c0_42 = arith.constant 0 : index
    %77 = vector.load %arg13[%c7_41, %c0_42] : memref<48x64xf32, #tpu.memory_space<vmem>>, vector<8x64xf32>
    %cst_43 = arith.constant 0.000000e+00 : f32
    %78 = vector.shape_cast %76 : vector<8x1xi1> to vector<8x1xi1>
    %79 = vector.broadcast %78 : vector<8x1xi1> to vector<8x64xi1>
    %80 = vector.broadcast %cst_43 : f32 to vector<8x64xf32>
    %81 = arith.select %79, %77, %80 : vector<8x64xi1>, vector<8x64xf32>
    %c3_i32_44 = arith.constant 3 : i32
    %82 = vector.broadcast %c3_i32_44 : i32 to vector<8x1xi32>
    %83 = arith.cmpi ne, %73, %82 : vector<8x1xi32>
    %c9_45 = arith.constant 9 : index
    %c0_46 = arith.constant 0 : index
    %84 = vector.load %arg13[%c9_45, %c0_46] : memref<48x64xf32, #tpu.memory_space<vmem>>, vector<8x64xf32>
    %cst_47 = arith.constant 0.000000e+00 : f32
    %85 = vector.shape_cast %83 : vector<8x1xi1> to vector<8x1xi1>
    %86 = vector.broadcast %85 : vector<8x1xi1> to vector<8x64xi1>
    %87 = vector.broadcast %cst_47 : f32 to vector<8x64xf32>
    %88 = arith.select %86, %84, %87 : vector<8x64xi1>, vector<8x64xf32>
    %89 = tpu.concatenate %81, %70, %88 in 1 : vector<8x64xf32>, vector<8x64xf32>, vector<8x64xf32> -> vector<8x192xf32>
    %90 = arith.truncf %89 : vector<8x192xf32> to vector<8x192xbf16>
    %c0_48 = arith.constant 0 : index
    %c0_49 = arith.constant 0 : index
    %91 = vector.load %arg6[%c0_48, %c0_49] : memref<192x32xbf16, #tpu.memory_space<vmem>>, vector<192x32xbf16>
    %cst_50 = arith.constant dense<0.000000e+00> : vector<8x32xf32>
    %92 = tpu.matmul %90, %91, %cst_50 {dimension_numbers = #tpu.dot_dimension_numbers<[1], [0], [0], [1], [0, 0, 1, 1], [], []>} : vector<8x192xbf16>, vector<192x32xbf16>, vector<8x32xf32> -> vector<8x32xf32>
    %c0_51 = arith.constant 0 : index
    %c0_52 = arith.constant 0 : index
    %93 = vector.load %arg7[%c0_51, %c0_52] : memref<1x32xf32, #tpu.memory_space<vmem>>, vector<1x32xf32>
    %94 = vector.broadcast %93 : vector<1x32xf32> to vector<8x32xf32>
    %95 = arith.addf %92, %94 : vector<8x32xf32>
    %cst_53 = arith.constant 0.000000e+00 : f32
    %96 = vector.broadcast %cst_53 : f32 to vector<8x32xf32>
    %97 = arith.maximumf %95, %96 : vector<8x32xf32>
    %c0_54 = arith.constant 0 : index
    %c0_55 = arith.constant 0 : index
    %98 = vector.load %arg14[%c0_54, %c0_55] : memref<32x64xf32, #tpu.memory_space<vmem>>, vector<8x32xf32>
    tpu.vector_store %arg14[%c0_54, %c0_55], %97 {strides = array<i32>} : memref<32x64xf32, #tpu.memory_space<vmem>>, vector<8x32xf32>,
    %c0_56 = arith.constant 0 : index
    %c0_57 = arith.constant 0 : index
    %99 = tpu.strided_load %arg14[%c0_56, %c0_57] {strides = array<i32: 2, 1>} : memref<32x64xf32, #tpu.memory_space<vmem>>, vector<4x32xf32>
    %c1_58 = arith.constant 1 : index
    %c0_59 = arith.constant 0 : index
    %100 = tpu.strided_load %arg14[%c1_58, %c0_59] {strides = array<i32: 2, 1>} : memref<32x64xf32, #tpu.memory_space<vmem>>, vector<4x32xf32>
    %101 = arith.maximumf %99, %100 : vector<4x32xf32>
    %c8_60 = arith.constant 8 : index
    %c0_61 = arith.constant 0 : index
    %102 = vector.load %arg13[%c8_60, %c0_61] : memref<48x64xf32, #tpu.memory_space<vmem>>, vector<4x32xf32>
    tpu.vector_store %arg13[%c8_60, %c0_61], %101 {strides = array<i32>} : memref<48x64xf32, #tpu.memory_space<vmem>>, vector<4x32xf32>,
    %c8_62 = arith.constant 8 : index
    %c0_63 = arith.constant 0 : index
    %103 = tpu.strided_load %arg13[%c8_62, %c0_63] {strides = array<i32: 2, 1>} : memref<48x64xf32, #tpu.memory_space<vmem>>, vector<2x32xf32>
    %c9_64 = arith.constant 9 : index
    %c0_65 = arith.constant 0 : index
    %104 = tpu.strided_load %arg13[%c9_64, %c0_65] {strides = array<i32: 2, 1>} : memref<48x64xf32, #tpu.memory_space<vmem>>, vector<2x32xf32>
    %105 = tpu.concatenate %103, %104 in 1 : vector<2x32xf32>, vector<2x32xf32> -> vector<2x64xf32>
    %106 = arith.truncf %105 : vector<2x64xf32> to vector<2x64xbf16>
    %c0_66 = arith.constant 0 : index
    %c0_67 = arith.constant 0 : index
    %107 = vector.load %arg8[%c0_66, %c0_67] : memref<64x64xbf16, #tpu.memory_space<vmem>>, vector<64x64xbf16>
    %cst_68 = arith.constant dense<0.000000e+00> : vector<2x64xf32>
    %108 = tpu.matmul %106, %107, %cst_68 {dimension_numbers = #tpu.dot_dimension_numbers<[1], [0], [0], [1], [0, 0, 1, 1], [], []>} : vector<2x64xbf16>, vector<64x64xbf16>, vector<2x64xf32> -> vector<2x64xf32>
    %c0_69 = arith.constant 0 : index
    %c0_70 = arith.constant 0 : index
    %109 = vector.load %arg9[%c0_69, %c0_70] : memref<1x64xf32, #tpu.memory_space<vmem>>, vector<1x64xf32>
    %110 = vector.broadcast %109 : vector<1x64xf32> to vector<2x64xf32>
    %111 = arith.addf %108, %110 : vector<2x64xf32>
    %cst_71 = arith.constant 0.000000e+00 : f32
    %112 = vector.broadcast %cst_71 : f32 to vector<2x64xf32>
    %113 = arith.maximumf %111, %112 : vector<2x64xf32>
    %114 = arith.truncf %113 : vector<2x64xf32> to vector<2x64xbf16>
    %c0_72 = arith.constant 0 : index
    %c0_73 = arith.constant 0 : index
    %115 = vector.load %arg10[%c0_72, %c0_73] : memref<64x128xbf16, #tpu.memory_space<vmem>>, vector<64x128xbf16>
    %cst_74 = arith.constant dense<0.000000e+00> : vector<2x128xf32>
    %116 = tpu.matmul %114, %115, %cst_74 {dimension_numbers = #tpu.dot_dimension_numbers<[1], [0], [0], [1], [0, 0, 1, 1], [], []>} : vector<2x64xbf16>, vector<64x128xbf16>, vector<2x128xf32> -> vector<2x128xf32>
    %c0_75 = arith.constant 0 : index
    %c0_76 = arith.constant 0 : index
    %117 = vector.load %arg11[%c0_75, %c0_76] : memref<1x128xf32, #tpu.memory_space<vmem>>, vector<1x128xf32>
    %118 = vector.broadcast %117 : vector<1x128xf32> to vector<2x128xf32>
    %119 = arith.addf %116, %118 : vector<2x128xf32>
    %cst_77 = arith.constant dense<0xFF800000> : vector<2xf32>
    %120 = vector.multi_reduction <maximumf>, %119, %cst_77 [1] : vector<2x128xf32> to vector<2xf32>
    %121 = vector.shape_cast %120 : vector<2xf32> to vector<2x1xf32>
    %122 = vector.broadcast %121 : vector<2x1xf32> to vector<2x128xf32>
    %123 = arith.subf %119, %122 : vector<2x128xf32>
    %124 = math.exp %123 : vector<2x128xf32>
    %cst_78 = arith.constant dense<0.000000e+00> : vector<2xf32>
    %125 = vector.multi_reduction <add>, %124, %cst_78 [1] : vector<2x128xf32> to vector<2xf32>
    %126 = vector.shape_cast %125 : vector<2xf32> to vector<2x1xf32>
    %127 = vector.broadcast %126 : vector<2x1xf32> to vector<2x128xf32>
    %128 = arith.divf %124, %127 : vector<2x128xf32>
    %c0_79 = arith.constant 0 : index
    %c0_80 = arith.constant 0 : index
    %129 = vector.load %arg12[%c0_79, %c0_80] : memref<2x128xf32, #tpu.memory_space<vmem>>, vector<2x128xf32>
    tpu.vector_store %arg12[%c0_79, %c0_80], %128 {strides = array<i32>} : memref<2x128xf32, #tpu.memory_space<vmem>>, vector<2x128xf32>,
    return
  }
  func.func @transform_0(%arg0: i32) -> (i32, i32) {
    %c0_i32 = arith.constant 0 : i32
    %c0_i32_0 = arith.constant 0 : i32
    return %arg0, %c0_i32 : i32, i32
  }
  func.func @transform_1(%arg0: i32) -> (i32, i32) {
    %c0_i32 = arith.constant 0 : i32
    %c0_i32_0 = arith.constant 0 : i32
    %c0_i32_1 = arith.constant 0 : i32
    return %c0_i32, %c0_i32_0 : i32, i32
  }
  func.func @transform_2(%arg0: i32) -> (i32, i32) {
    %c0_i32 = arith.constant 0 : i32
    %c0_i32_0 = arith.constant 0 : i32
    %c0_i32_1 = arith.constant 0 : i32
    return %c0_i32, %c0_i32_0 : i32, i32
  }
  func.func @transform_3(%arg0: i32) -> (i32, i32) {
    %c0_i32 = arith.constant 0 : i32
    %c0_i32_0 = arith.constant 0 : i32
    %c0_i32_1 = arith.constant 0 : i32
    return %c0_i32, %c0_i32_0 : i32, i32
  }
  func.func @transform_4(%arg0: i32) -> (i32, i32) {
    %c0_i32 = arith.constant 0 : i32
    %c0_i32_0 = arith.constant 0 : i32
    %c0_i32_1 = arith.constant 0 : i32
    return %c0_i32, %c0_i32_0 : i32, i32
  }
  func.func @transform_5(%arg0: i32) -> (i32, i32) {
    %c0_i32 = arith.constant 0 : i32
    %c0_i32_0 = arith.constant 0 : i32
    %c0_i32_1 = arith.constant 0 : i32
    return %c0_i32, %c0_i32_0 : i32, i32
  }
  func.func @transform_6(%arg0: i32) -> (i32, i32) {
    %c0_i32 = arith.constant 0 : i32
    %c0_i32_0 = arith.constant 0 : i32
    %c0_i32_1 = arith.constant 0 : i32
    return %c0_i32, %c0_i32_0 : i32, i32
  }
  func.func @transform_7(%arg0: i32) -> (i32, i32) {
    %c0_i32 = arith.constant 0 : i32
    %c0_i32_0 = arith.constant 0 : i32
    %c0_i32_1 = arith.constant 0 : i32
    return %c0_i32, %c0_i32_0 : i32, i32
  }
  func.func @transform_8(%arg0: i32) -> (i32, i32) {
    %c0_i32 = arith.constant 0 : i32
    %c0_i32_0 = arith.constant 0 : i32
    %c0_i32_1 = arith.constant 0 : i32
    return %c0_i32, %c0_i32_0 : i32, i32
  }
  func.func @transform_9(%arg0: i32) -> (i32, i32) {
    %c0_i32 = arith.constant 0 : i32
    %c0_i32_0 = arith.constant 0 : i32
    %c0_i32_1 = arith.constant 0 : i32
    return %c0_i32, %c0_i32_0 : i32, i32
  }
  func.func @transform_10(%arg0: i32) -> (i32, i32) {
    %c0_i32 = arith.constant 0 : i32
    %c0_i32_0 = arith.constant 0 : i32
    %c0_i32_1 = arith.constant 0 : i32
    return %c0_i32, %c0_i32_0 : i32, i32
  }
  func.func @transform_11(%arg0: i32) -> (i32, i32) {
    %c0_i32 = arith.constant 0 : i32
    %c0_i32_0 = arith.constant 0 : i32
    return %arg0, %c0_i32 : i32, i32
  }
}

</mosaic_0001>

<bundles_post_ra>
// kernel: cnn_forward.1
= control target key start
LH: loop header
LB: loop body
LE: loop exit
PB: predicated region body
PF: predicated region fallthrough
CT: control target
= control target key end

     0   :  { %vm53_vm0 = vcmask 7168   ;;  %v44_v3 = vlaneseq  ;;  %v897_v4 = vmov 0   ;;  %s1155_s0 = inlined_call_operand.vmem [shape: f32[32,1], index: 0, kind: input, shape index: {}]   ;;  %s1156_s1 = inlined_call_operand.vmem [shape: bf16[3,32], index: 1, kind: input, shape index: {}]   ;;  %s1157_s2 = inlined_call_operand.vmem [shape: f32[1,32], index: 2, kind: input, shape index: {}]   ;;  %s1158_s3 = inlined_call_operand.vmem [shape: bf16[96,64], index: 3, kind: input, shape index: {}]   ;;  %s1159_s4 = inlined_call_operand.vmem [shape: f32[1,64], index: 4, kind: input, shape index: {}]   ;;  %s1160_s5 = inlined_call_operand.vmem [shape: bf16[192,32], index: 5, kind: input, shape index: {}]   ;;  %s1161_s6 = inlined_call_operand.vmem [shape: f32[1,32], index: 6, kind: input, shape index: {}]   ;;  %s1162_s7 = inlined_call_operand.vmem [shape: bf16[64,64], index: 7, kind: input, shape index: {}]   ;;  %s1163_s8 = inlined_call_operand.vmem [shape: f32[1,64], index: 8, kind: input, shape index: {}]   ;;  %s1164_s9 = inlined_call_operand.vmem [shape: bf16[64,128], index: 9, kind: input, shape index: {}]   ;;  %s1165_s10 = inlined_call_operand.vmem [shape: f32[1,128], index: 10, kind: input, shape index: {}]   ;;  %s1166_s11 = inlined_call_operand.hbm [shape: f32[2,128], index: 11, kind: output, shape index: {}]  }
   0x1   :  { %v41_v0 = vld [vmem:[%s1155_s0 + $0x8] sm:$0xff]  ;;  %v42_v1 = vld [vmem:[%s1155_s0 + $0x10] sm:$0xff]  ;;  %v43_v2 = vld [vmem:[%s1155_s0 + $0x18] sm:$0xff]  ;;  %832 = vset.pattern.permute.xlu1 %v897_v4  ;;  %831 = vset.pattern.permute.xlu0 %v897_v4 }
   0x2   :  { %56 = vst.msk [vmem:[#allocation2 + $0x18] sm:$0xff] %vm53_vm0, %v42_v1  ;;  %57 = vst.msk [vmem:[#allocation2 + $0x20] sm:$0xff] %vm53_vm0, %v43_v2  ;;  %v40_v5 = vld [vmem:[%s1155_s0] sm:$0xff]  ;;  %119 = vperm.xlu1 %832, %v41_v0   ;;  %v977_v6 = vshrl.u32 %v44_v3, 7  ;;  %483 = vmatprep.subr.bf16.mxu1 %v897_v4 }
   0x3   :  { %55 = vst.msk [vmem:[#allocation2 + $0x10] sm:$0xff] %vm53_vm0, %v41_v0  ;;  %114 = vperm.xlu0 %831, %v40_v5   ;;  %54 = vst.msk [vmem:[#allocation2 + $0x8] sm:$0xff] %vm53_vm0, %v40_v5 }
   0x4   :  { %v47_v7 = vadd.s32 16, %v977_v6  ;;  %v49_v8 = vand.u32 15, %v977_v6  ;;  %v983_v9 = vadd.s32 8, %v977_v6  ;;  %v48_v10 = vadd.s32 24, %v977_v6 }
   0x6   :  { %v51_v11 = vand.u32 15, %v47_v7  ;;  %v50_v12 = vand.u32 15, %v983_v9  ;;  %v52_v13 = vand.u32 15, %v48_v10  ;;  %vm58_vm2 = vcmp.ne.s32.totalorder %v49_v8, 0 }
   0x8   :  { %vm60_vm1 = vcmp.ne.s32.totalorder %v51_v11, 0  ;;  %vm71_vm3 = vcmp.ne.s32.totalorder %v50_v12, 15  ;;  %vm73_vm4 = vcmp.ne.s32.totalorder %v52_v13, 15 }
   0x9   :  { %v65_v14 = vld [vmem:[#allocation2 + $0x1f] sm:$0xff] }
   0xa   :  { %v64_v15 = vld [vmem:[#allocation2 + $0x17] sm:$0xff]  ;;  %101 = vperm.xlu1 %832, %v65_v14   ;;  %v63_v16 = vld [vmem:[#allocation2 + $0xf] sm:$0xff]  ;;  %v62_v17 = vld [vmem:[#allocation2 + $0x7] sm:$0xff] }
   0xb   :  { %91 = vperm.xlu0 %831, %v63_v16   ;;  %v68_v18 = vsel %vm60_vm1, %v64_v15, 0.0  ;;  %v66_v19 = vsel %vm58_vm2, %v62_v17, 0.0  ;;  %v75_v20 = vld [vmem:[#allocation2 + $0x11] sm:$0xff]  ;;  %v77_v21 = vld [vmem:[#allocation2 + $0x21] sm:$0xff]  ;;  %v74_v23 = vld [vmem:[#allocation2 + $0x9] sm:$0xff] }
   0xc   :  { %v79_v22 = vsel %vm71_vm3, %v75_v20, 0.0  ;;  %v81_v24 = vsel %vm73_vm4, %v77_v21, 0.0  ;;  %v76_v25 = vld [vmem:[#allocation2 + $0x19] sm:$0xff] }
   0xe   :  { %96 = vperm.xlu1 %832, %v68_v18  }
   0xf   :  { %86 = vperm.xlu0 %831, %v66_v19  }
  0x12   :  { %129 = vperm.xlu1 %832, %v43_v2  }
  0x13   :  { %124 = vperm.xlu0 %831, %v42_v1  }
  0x16   :  { %151 = vperm.xlu1 %832, %v79_v22  }
  0x17   :  { %146 = vperm.xlu0 %831, %v74_v23  }
  0x1a   :  { %161 = vperm.xlu1 %832, %v81_v24  }
  0x1b   :  { %16 = vsyncpa [#allocation5], 0  ;;  %156 = vperm.xlu0 %831, %v76_v25   ;;  %v843_v26 = vld [vmem:[%s1158_s3] sm:$0xff]   ;;  %v898_v27 = vmov 0.0   ;;  %v844_v28 = vld [vmem:[%s1158_s3 + $0x8] sm:$0xff]   ;;  %v106_v34 = vsub.s32 0, %v977_v6 }
  0x1c   :  { %785 = vmatprep.subr.bf16.mxu0 %v898_v27  ;;  %v845_v29 = vld [vmem:[%s1158_s3 + $0x10] sm:$0xff]   ;;  %v82_v32 = vld [vmem:[%s1156_s1] sm:$0x3]  ;;  %v134_v37 = vsub.s32 1, %v977_v6  ;;  %v166_v41 = vsub.s32 2, %v977_v6  ;;  %vm191_vm5 = vcmask 261120  }
  0x1d   :  { %786 = vmatpush3.bf16.msra.mxu0 %v843_v26  ;;  %v83_v36 = vunpack.c.l.bf16 %v82_v32  ;;  %v733_v57 = vld [vmem:[%s1157_s2] ss:$0 sm:$0xff]  ;;  %v846_v18 = vld [vmem:[%s1158_s3 + $0x18] sm:$0xff]   ;;  %v848_v26 = vld [vmem:[%s1158_s3 + $0x28] sm:$0xff]   ;;  %s899_s19 = smov 32   ;;  %vm900_vm6 = vmmov 0  }
  0x1e   :  { %787 = vmatprep.subr.bf16.mxu0 %v898_v27  ;;  %v847_v19 = vld [vmem:[%s1158_s3 + $0x20] sm:$0xff]   ;;  %797 = vmatprep.mubr.msk.bf16.mxu0 %vm900_vm6, %v898_v27  ;;  %s901_s3 = smov 64   ;;  %vm247_vm11 = vcmask 523264   ;;  %vm306_vm12 = vcmask 785408   ;;  %vm528_vm15 = vcmask 257024   ;;  %vm706_vm0 = vcmask 1041408  }
  0x1f   :  { %v107_v39 = vrot.slane %v83_v36, %v106_v34  ;;  %v135_v42 = vrot.slane %v83_v36, %v134_v37  ;;  %v167_v46 = vrot.slane %v83_v36, %v166_v41 }
  0x21   :  { %788 = vmatpush3.bf16.msra.mxu0 %v844_v28 }
  0x22   :  { %789 = vmatprep.subr.bf16.mxu0 %v898_v27 }
  0x25   :  { %790 = vmatpush3.bf16.msra.mxu0 %v845_v29  ;;  %v206_v29 = vand.u32 7, %v983_v9 }
  0x26   :  { %791 = vmatprep.subr.bf16.mxu0 %v898_v27 }
  0x27   :  { %vm220_vm8 = vcmp.ne.s32.totalorder %v206_v29, 7  ;;  %vm210_vm9 = vcmp.ne.s32.totalorder %v206_v29, 0 }
  0x29   :  { %792 = vmatpush3.bf16.msra.mxu0 %v846_v18 }
  0x2a   :  { %793 = vmatprep.subr.bf16.mxu0 %v898_v27 }
  0x2d   :  { %794 = vmatpush3.bf16.msra.mxu0 %v847_v19 }
  0x2e   :  { %795 = vmatprep.subr.bf16.mxu0 %v898_v27 }
  0x31   :  { %796 = vmatpush3.bf16.msra.mxu0 %v848_v26 }
  0x32   :  { %801 = vmatprep.subr.bf16.mxu0 %v898_v27 }
  0x81   :  { %v120_v30 = vpop.permute.xlu1 %119 }
  0x82   :  { %v115_v31 = vpop.permute.xlu0 %114  ;;  %v137_v48 = vmul.f32 %v135_v42, %v120_v30  ;;  %v205_v30 = vand.u32 7, %v977_v6 }
  0x83   :  { %v136_v49 = vmul.f32 %v135_v42, %v115_v31 }
  0x84   :  { %vm219_vm7 = vcmp.ne.s32.totalorder %v205_v30, 7  ;;  %vm209_vm10 = vcmp.ne.s32.totalorder %v205_v30, 0 }
  0x89   :  { %v102_v33 = vpop.permute.xlu1 %101 }
  0x8a   :  { %v92_v35 = vpop.permute.xlu0 %91  ;;  %v111_v59 = vmul.f32 %v107_v39, %v102_v33 }
  0x8b   :  { %v109_v44 = vmul.f32 %v107_v39, %v92_v35 }
  0x8d   :  { %v97_v38 = vpop.permute.xlu1 %96  ;;  %v141_v51 = vadd.f32 %v137_v48, %v109_v44 }
  0x8e   :  { %v87_v40 = vpop.permute.xlu0 %86  ;;  %v110_v61 = vmul.f32 %v107_v39, %v97_v38 }
  0x8f   :  { %v108_v47 = vmul.f32 %v107_v39, %v87_v40 }
  0x91   :  { %v130_v43 = vpop.permute.xlu1 %129  ;;  %v140_v55 = vadd.f32 %v136_v49, %v108_v47 }
  0x92   :  { %v125_v45 = vpop.permute.xlu0 %124  ;;  %v139_v52 = vmul.f32 %v135_v42, %v130_v43 }
  0x93   :  { %v138_v56 = vmul.f32 %v135_v42, %v125_v45 }
  0x94   :  { %v143_v0 = vadd.f32 %v139_v52, %v111_v59  ;;  %v851_v52 = vld [vmem:[%s1160_s5 + $0x10] sm:$0xff]   ;;  %v858_v59 = vld [vmem:[%s1160_s5 + $0x48] sm:$0xff]  }
  0x95   :  { %v152_v50 = vpop.permute.xlu1 %151  ;;  %v142_v5 = vadd.f32 %v138_v56, %v110_v61  ;;  %v855_v56 = vld [vmem:[%s1160_s5 + $0x30] sm:$0xff]   ;;  %v734_v61 = vld [vmem:[%s1159_s4] ss:$0 sm:$0xff] }
  0x96   :  { %v169_v53 = vmul.f32 %v167_v46, %v152_v50  ;;  %v147_v54 = vpop.permute.xlu0 %146  ;;  %v849_v50 = vld [vmem:[%s1160_s5] sm:$0xff]  }
  0x97   :  { %v168_v58 = vmul.f32 %v167_v46, %v147_v54  ;;  %484 = vmatpush1.bf16.msra.mxu1 %v849_v50  ;;  %v853_v54 = vld [vmem:[%s1160_s5 + $0x20] sm:$0xff]  }
  0x98   :  { %v173_v60 = vadd.f32 %v169_v53, %v141_v51  ;;  %v850_v51 = vld [vmem:[%s1160_s5 + $0x8] sm:$0xff]   ;;  %485 = vmatprep.subr.bf16.mxu1 %v897_v4  ;;  %v852_v53 = vld [vmem:[%s1160_s5 + $0x18] sm:$0xff]  }
  0x99   :  { %v172_v62 = vadd.f32 %v168_v58, %v140_v55  ;;  %v162_v63 = vpop.permute.xlu1 %161  ;;  %v854_v55 = vld [vmem:[%s1160_s5 + $0x28] sm:$0xff]   ;;  %v857_v58 = vld [vmem:[%s1160_s5 + $0x40] sm:$0xff]  }
  0x9a   :  { %v184_v1 = vadd.f32 %v733_v57, %v173_v60  ;;  %v171_v2 = vmul.f32 %v167_v46, %v162_v63  ;;  %v157_v3 = vpop.permute.xlu0 %156  ;;  %v859_v60 = vld [vmem:[%s1160_s5 + $0x50] sm:$0xff]  }
  0x9b   :  { %v183_v7 = vadd.f32 %v733_v57, %v172_v62  ;;  %v170_v8 = vmul.f32 %v167_v46, %v157_v3  ;;  %486 = vmatpush1.bf16.msra.mxu1 %v850_v51 }
  0x9c   :  { %v188_v10 = vmax.f32 %v184_v1, 0.0  ;;  %v175_v11 = vadd.f32 %v171_v2, %v143_v0  ;;  %487 = vmatprep.subr.bf16.mxu1 %v897_v4  ;;  %v860_v2 = vld [vmem:[%s1160_s5 + $0x58] sm:$0xff]  }
  0x9d   :  { %v187_v12 = vmax.f32 %v183_v7, 0.0  ;;  %v174_v13 = vadd.f32 %v170_v8, %v142_v5 }
  0x9e   :  { %193 = vst.msk [vmem:[#allocation3 + $0x8] sm:$0xff] %vm191_vm5, %v188_v10  ;;  %v186_v14 = vadd.f32 %v733_v57, %v175_v11 }
  0x9f   :  { %192 = vst.msk [vmem:[#allocation3] sm:$0xff] %vm191_vm5, %v187_v12  ;;  %v185_v15 = vadd.f32 %v733_v57, %v174_v13  ;;  %488 = vmatpush1.bf16.msra.mxu1 %v851_v52  ;;  %v856_v57 = vld [vmem:[%s1160_s5 + $0x38] sm:$0xff]   ;;  %v358_v12 = vand.u32 3, %v977_v6  ;;  %v862_v6 = vld [vmem:[%s1162_s7 + $0x8] sm:$0xff]  }
  0xa0   :  { %v190_v16 = vmax.f32 %v186_v14, 0.0  ;;  %489 = vmatprep.subr.bf16.mxu1 %v897_v4 }
  0xa1   :  { %v189_v17 = vmax.f32 %v185_v15, 0.0  ;;  %vm365_vm13 = vcmp.ne.s32.totalorder %v358_v12, 3  ;;  %vm360_vm14 = vcmp.ne.s32.totalorder %v358_v12, 0 }
  0xa2   :  { %195 = vst.msk [vmem:[#allocation3 + $0x18] sm:$0xff] %vm191_vm5, %v190_v16 }
  0xa3   :  { %194 = vst.msk [vmem:[#allocation3 + $0x10] sm:$0xff] %vm191_vm5, %v189_v17  ;;  %490 = vmatpush1.bf16.msra.mxu1 %v852_v53 }
  0xa4   :  { %491 = vmatprep.subr.bf16.mxu1 %v897_v4 }
  0xa6   :  { %v196_v20 = vld [vmem:[#allocation3] ss:$2 sm:$0xff]  ;;  %v200_v21 = vld [vmem:[#allocation3 + $0x1] ss:$2 sm:$0xff] }
  0xa7   :  { %v203_v22 = vmax.f32 %v196_v20, %v200_v21  ;;  %492 = vmatpush1.bf16.msra.mxu1 %v853_v54  ;;  %v861_v21 = vld [vmem:[%s1162_s7] sm:$0xff]  }
  0xa8   :  { %493 = vmatprep.subr.bf16.mxu1 %v897_v4 }
  0xa9   :  { %207 = vst.msk [vmem:[#allocation2 + $0x8] sm:$0xff] %vm191_vm5, %v203_v22 }
  0xaa   :  { %v198_v23 = vld [vmem:[#allocation3 + $0x10] ss:$2 sm:$0xff]  ;;  %v202_v24 = vld [vmem:[#allocation3 + $0x11] ss:$2 sm:$0xff] }
  0xab   :  { %v204_v25 = vmax.f32 %v198_v23, %v202_v24  ;;  %494 = vmatpush1.bf16.msra.mxu1 %v854_v55  ;;  %v742_v23 = vld [vmem:[%s1161_s6] ss:$0 sm:$0xff] }
  0xac   :  { %495 = vmatprep.subr.bf16.mxu1 %v897_v4 }
  0xad   :  { %v833_v28 = vpack.i.bf16 %v204_v25, %v203_v22  ;;  %208 = vst.msk [vmem:[#allocation2 + $0x10] sm:$0xff] %vm191_vm5, %v204_v25  ;;  %v863_v22 = vld [vmem:[%s1162_s7 + $0x10] sm:$0xff]  }
  0xaf   :  { %834 = vrot.lane.b32.xlu0 %v833_v28, %s899_s19  ;;  %496 = vmatpush1.bf16.msra.mxu1 %v855_v56 }
  0xb0   :  { %v211_v36 = vld [vmem:[#allocation2 + $0x7] sm:$0xff]  ;;  %497 = vmatprep.subr.bf16.mxu1 %v897_v4 }
  0xb1   :  { %v217_v41 = vsel %vm209_vm10, %v211_v36, 0.0 }
  0xb3   :  { %498 = vmatpush1.bf16.msra.mxu1 %v856_v57 }
  0xb4   :  { %v221_v31 = vld [vmem:[#allocation2 + $0x9] sm:$0xff]  ;;  %v222_v32 = vld [vmem:[#allocation2 + $0x11] sm:$0xff]  ;;  %499 = vmatprep.subr.bf16.mxu1 %v897_v4 }
  0xb5   :  { %v227_v33 = vsel %vm219_vm7, %v221_v31, 0.0  ;;  %v228_v34 = vsel %vm220_vm8, %v222_v32, 0.0  ;;  %v212_v39 = vld [vmem:[#allocation2 + $0xf] sm:$0xff]  ;;  %v864_v31 = vld [vmem:[%s1162_s7 + $0x18] sm:$0xff]  }
  0xb6   :  { %v838_v35 = vpack.i.bf16 %v228_v34, %v227_v33  ;;  %v218_v42 = vsel %vm210_vm9, %v212_v39, 0.0 }
  0xb7   :  { %500 = vmatpush1.bf16.msra.mxu1 %v857_v58 }
  0xb8   :  { %839 = vrot.lane.b32.xlu1 %v838_v35, %s901_s3  ;;  %501 = vmatprep.subr.bf16.mxu1 %v897_v4 }
  0xbb   :  { %502 = vmatpush1.bf16.msra.mxu1 %v858_v59 }
  0xbc   :  { %503 = vmatprep.subr.bf16.mxu1 %v897_v4 }
  0xbf   :  { %504 = vmatpush1.bf16.msra.mxu1 %v859_v60 }
  0xc0   :  { %505 = vmatprep.subr.bf16.mxu1 %v897_v4 }
  0xc3   :  { %506 = vmatpush1.bf16.msra.mxu1 %v860_v2 }
 0x121   :  { %v835_v9 = vpop.permute.xlu0 %834 }
 0x122   :  { %v837_v37 = vunpack.i.h.bf16 %v835_v9  ;;  %v836_v38 = vunpack.i.l.bf16 %v835_v9 }
 0x124   :  { %v245_v45 = vsel %vm191_vm5, %v217_v41, %v836_v38  ;;  %v246_v46 = vsel %vm191_vm5, %v218_v42, %v837_v37  ;;  %v865_v38 = vld [vmem:[%s1164_s9] sm:$0xff]   ;;  %v867_v41 = vld [vmem:[%s1164_s9 + $0x10] sm:$0xff]   ;;  %v868_v42 = vld [vmem:[%s1164_s9 + $0x18] sm:$0xff]  }
 0x12a   :  { %v840_v40 = vpop.permute.xlu1 %839 }
 0x12b   :  { %v842_v43 = vunpack.i.h.bf16 %v840_v40  ;;  %v841_v44 = vunpack.i.l.bf16 %v840_v40  ;;  %v866_v40 = vld [vmem:[%s1164_s9 + $0x8] sm:$0xff]  }
 0x12d   :  { %v248_v47 = vsel %vm247_vm11, %v245_v45, %v841_v44  ;;  %v249_v48 = vsel %vm247_vm11, %v246_v46, %v842_v43  ;;  %v756_v43 = vld [vmem:[%s1163_s8] ss:$0 sm:$0xff]  ;;  %s902_s8 = smov [#allocation4]  }
 0x12e   :  { %v250_v49 = vpack.c.bf16 %v249_v48, %v248_v47  ;;  %s725_s9 = sshll.u32 %s902_s8, 4  ;;  %s726_s9 = int_to_ptr.vmem [resolvable:$true] %s725_s9 }
 0x12f   :  { %p878_p1 = scmp.lt.s32.totalorder %s726_s9, %s726_s9 }
 0x130   :  { %798 = vmatmul.mubr.msk.bf16.vlgmr.msra.gmra.mrb[0].mxu0 %vm306_vm12, %v250_v49 }
 0x131   :  { %809 = vmatprep.mubr.msk.bf16.mxu0 %vm900_vm6, %v898_v27  ;;  %802 = vmatpush3.bf16.msra.mxu0 %v861_v21 }
 0x132   :  { %803 = vmatprep.subr.bf16.mxu0 %v898_v27 }
 0x135   :  { %804 = vmatpush3.bf16.msra.mxu0 %v862_v6 }
 0x136   :  { %805 = vmatprep.subr.bf16.mxu0 %v898_v27 }
 0x139   :  { %806 = vmatpush3.bf16.msra.mxu0 %v863_v22 }
 0x13a   :  { %807 = vmatprep.subr.bf16.mxu0 %v898_v27 }
 0x13d   :  { %808 = vmatpush3.bf16.msra.mxu0 %v864_v31 }
 0x13e   :  { %813 = vmatprep.subr.bf16.mxu0 %v898_v27 }
 0x203   :  { %v344_v62 = vpop.f32.mrb[0].mxu0 }
 0x204   :  { %v345_v63 = vadd.f32 %v734_v61, %v344_v62  ;;  %v799_v0 = vpop.f32.mrb[1].mxu0 }
 0x205   :  { %v347_v1 = vpop.f32.mrb[2].mxu0 }
 0x206   :  { %v351_v3 = vmax.f32 %v345_v63, 0.0  ;;  %v348_v5 = vadd.f32 %v734_v61, %v347_v1  ;;  %v800_v7 = vpop.f32.mrb[3].mxu0 }
 0x208   :  { %353 = vst.msk [vmem:[#allocation3] sm:$0xff] %vm247_vm11, %v351_v3  ;;  %v352_v8 = vmax.f32 %v348_v5, 0.0 }
 0x20a   :  { %354 = vst.msk [vmem:[#allocation3 + $0x8] sm:$0xff] %vm247_vm11, %v352_v8 }
 0x211   :  { %v355_v4 = vld [vmem:[#allocation3] ss:$2 sm:$0xff]  ;;  %v356_v10 = vld [vmem:[#allocation3 + $0x1] ss:$2 sm:$0xff] }
 0x212   :  { %v357_v11 = vmax.f32 %v355_v4, %v356_v10 }
 0x214   :  { %371 = vrot.lane.b32.xlu0 %v357_v11, %s901_s3  ;;  %359 = vst.msk [vmem:[#allocation2 + $0x8] sm:$0xff] %vm247_vm11, %v357_v11 }
 0x21b   :  { %v366_v13 = vld [vmem:[#allocation2 + $0x9] sm:$0xff] }
 0x21c   :  { %v369_v14 = vsel %vm365_vm13, %v366_v13, 0.0  ;;  %v361_v16 = vld [vmem:[#allocation2 + $0x7] sm:$0xff] }
 0x21d   :  { %v376_v15 = vpack.c.bf16 %v369_v14, %v369_v14  ;;  %v364_v18 = vsel %vm360_vm14, %v361_v16, 0.0 }
 0x21f   :  { %755 = vmatprep.mubr.msk.bf16.mxu1 %vm247_vm11, %v376_v15 }
 0x286   :  { %v372_v17 = vpop.permute.xlu0 %371 }
 0x287   :  { %v374_v19 = vsel %vm247_vm11, %v364_v18, %v372_v17 }
 0x288   :  { %v375_v20 = vpack.c.bf16 %v374_v19, %v374_v19 }
 0x28a   :  { %516 = vmatmul.mubr.bf16.vlgmr.msra.gmra.mrb[0].mxu1 %v375_v20 }
 0x35d   :  { %v517_v24 = vpop.f32.mrb[0].mxu1 }
 0x35e   :  { %v518_v25 = vadd.f32 %v742_v23, %v517_v24  ;;  %v519_v26 = vpop.f32.mrb[1].mxu1 }
 0x35f   :  { %v520_v28 = vpop.f32.mrb[2].mxu1 }
 0x360   :  { %v523_v29 = vmax.f32 %v518_v25, 0.0  ;;  %v521_v30 = vpop.f32.mrb[3].mxu1 }
 0x362   :  { %524 = vst.msk [vmem:[#allocation3] sm:$0xff] %vm191_vm5, %v523_v29 }
 0x369   :  { %v525_v32 = vld [vmem:[#allocation3] ss:$2 sm:$0xf]  ;;  %v526_v33 = vld [vmem:[#allocation3 + $0x1] ss:$2 sm:$0xf] }
 0x36a   :  { %v527_v34 = vmax.f32 %v525_v32, %v526_v33 }
 0x36c   :  { %529 = vst.msk [vmem:[#allocation2 + $0x8] sm:$0xf] %vm528_vm15, %v527_v34 }
 0x373   :  { %v533_v35 = vld [vmem:[#allocation2 + $0x9] ss:$2 sm:$0x3]  ;;  %v531_v36 = vld [vmem:[#allocation2 + $0x8] ss:$2 sm:$0x3] }
 0x374   :  { %535 = vrot.lane.b32.xlu1 %v533_v35, %s899_s19 }
 0x3e6   :  { %v536_v9 = vpop.permute.xlu1 %535 }
 0x3e7   :  { %v538_v37 = vsel %vm191_vm5, %v531_v36, %v536_v9 }
 0x3e8   :  { %v539_v39 = vpack.c.bf16 %v538_v37, %v538_v37 }
 0x3ea   :  { %810 = vmatmul.mubr.msk.bf16.vlgmr.msra.gmra.mrb[4].mxu0 %vm247_vm11, %v539_v39 }
 0x3eb   :  { %814 = vmatpush3.bf16.msra.mxu0 %v865_v38  ;;  %821 = vmatprep.mubr.msk.bf16.mxu0 %vm900_vm6, %v898_v27 }
 0x3ec   :  { %815 = vmatprep.subr.bf16.mxu0 %v898_v27 }
 0x3ef   :  { %816 = vmatpush3.bf16.msra.mxu0 %v866_v40 }
 0x3f0   :  { %817 = vmatprep.subr.bf16.mxu0 %v898_v27 }
 0x3f3   :  { %818 = vmatpush3.bf16.msra.mxu0 %v867_v41 }
 0x3f4   :  { %819 = vmatprep.subr.bf16.mxu0 %v898_v27  ;;  %v762_v27 = vld [vmem:[%s1165_s10] ss:$0 sm:$0xff]  ;;  %s873_s10 = scalar_lea.vmem %s726_s9, 32 }
 0x3f5   :  { %p874_p0 = scmp.ne.s32.totalorder %s726_s9, %s873_s10  ;;  %p879_p2 = scmp.lt.s32.totalorder %s873_s10, %s873_s10 }
 0x3f7   :  { %820 = vmatpush3.bf16.msra.mxu0 %v868_v42  ;;  %p880_p3 = por %p879_p2, %p878_p1 }
 0x3f9   :  { %p881_p4 = pnand %p880_p3, %p874_p0 }
 0x4bd   :  { %v616_v44 = vpop.f32.mrb[4].mxu0 }
 0x4be   :  { %v617_v45 = vadd.f32 %v756_v43, %v616_v44  ;;  %v811_v46 = vpop.f32.mrb[5].mxu0 }
 0x4bf   :  { %v619_v47 = vpop.f32.mrb[6].mxu0 }
 0x4c0   :  { %v622_v48 = vmax.f32 %v617_v45, 0.0  ;;  %v812_v49 = vpop.f32.mrb[7].mxu0 }
 0x4c2   :  { %v623_v50 = vpack.c.bf16 %v622_v48, %v622_v48 }
 0x4c4   :  { %822 = vmatmul.mubr.msk.bf16.vlgmr.msra.gmra.mrb[8].mxu0 %vm247_vm11, %v623_v50 }
 0x597   :  { %v700_v51 = vpop.f32.mrb[8].mxu0 }
 0x598   :  { %v701_v52 = vadd.f32 %v762_v27, %v700_v51  ;;  %v823_v53 = vpop.f32.mrb[9].mxu0 }
 0x599   :  { %v703_v54 = vpop.f32.mrb[10].mxu0 }
 0x59a   :  { %v824_v55 = vpop.f32.mrb[11].mxu0  ;;  %v707_v56 = vsel %vm706_vm0, %v701_v52, -inf }
 0x59b   :  { %708 = vmax.xlane.f32.xlu0 %v707_v56 }
 0x628   :  { %v709_v57 = vpop.xlane.xlu0 %708 }
 0x629   :  { %v710_v58 = vsub.f32 %v701_v52, %v709_v57 }
 0x62b   :  { %v711_v59 = vmul.f32 1.442695, %v710_v58 }
 0x62d   :  { %869 = vpow2.f32 %v711_v59 }
 0x637   :  { %v870_v60 = vpop.eup %869 }
 0x638   :  { %v713_v61 = vsel %vm706_vm0, %v870_v60, 0.0 }
 0x639   :  { %714 = vadd.xlane.f32.xlu1 %v713_v61 }
 0x6c6   :  { %v715_v62 = vpop.xlane.xlu1 %714 }
 0x6c7   :  { %871 = vrcp.f32 %v715_v62 }
 0x6d1   :  { %v872_v63 = vpop.eup %871 }
 0x6d2   :  { %v717_v0 = vmul.f32 %v872_v63, %v870_v60 }
 0x6d4   :  { %718 = vst [vmem:[#allocation4] sm:$0x3] %v717_v0 }
 0x6d5   :  { %884 = shalt.err (!%p881_p4)
}
 0x6d6   :  { %s885_s22 = scalar_lea.hbm %s1166_s11, 32 }
 0x6d7   :  { %p886_p5 = scmp.ne.s32.totalorder %s1166_s11, %s885_s22  ;;  %p889_p6 = scmp.lt.u32.totalorder %s885_s22, %s1166_s11 }
 0x6d9   :  { %p891_p7 = pnand %p889_p6, %p886_p5 }
 0x6db   :  { %894 = shalt.err (!%p891_p7)
}
 0x6dc   :  { %728 = dma.vmem_to_hbm [thread:$0]  %s726_s9, 32, %s1166_s11, [#allocation5]  }
 0x6dd   :  { %895 = dma.done.wait [#allocation5], 32  }
 0x6de   :  { %896 = vsyncadd [#allocation5], 4294967264 }
 0x6df   :  { %732 = vsyncpa [#allocation5], 1 }

</bundles_post_ra>
